<compile_context>
chip_gen: v5e
topology: v5e:2x2
jax: 0.10.0
libtpu: 0.0.40
codegen_flags: <defaults>
</compile_context>

<pallas_src>
import jax
import jax.numpy as jnp
from jax.experimental import pallas as pl
from jax.experimental.pallas import tpu as pltpu


def _padding_mask_kernel(row_ref, o_ref):
    # row_ref: (1, 1, K) bool  -- key-row mask for this batch element.
    # o_ref:   (1, TQ, K) bool -- output tile for (batch=bi, query tile=qi).
    o_ref[...] = jnp.broadcast_to(row_ref[...], o_ref.shape)


def _chip_budgets() -> tuple[int, int]:
    """(output block budget bytes, vmem_limit_bytes) tuned per TPU generation."""
    try:
        kind = jax.devices()[0].device_kind.lower()
    except Exception:  # pragma: no cover - defensive
        kind = ""
    if "v7" in kind:
        # 3.2 TB/s HBM makes the ~0.35 us/step overhead significant; 64 MiB VMEM
        # still fits a double-buffered ~12 MiB output block comfortably.
        return 12 * 1024 * 1024, 48 * 1024 * 1024
    if "v6" in kind:
        return 8 * 1024 * 1024, 40 * 1024 * 1024
    # v5e / unknown: stay conservative (scoped default is only 16 MiB on v5e,
    # so the explicit 32 MiB override matters).
    return 4 * 1024 * 1024, 32 * 1024 * 1024


def _choose_query_tile(seq_len: int, key_len: int, budget_bytes: int) -> int:
    """Query-tile size: multiple of 32 (bool native tile), capped by block budget."""
    if seq_len < 32:
        return seq_len  # full query dim -> legal block regardless of alignment
    key_lanes = ((key_len + 127) // 128) * 128  # VMEM footprint is lane-padded
    budget_rows = max(32, budget_bytes // max(key_lanes, 1))
    tq = min(seq_len, budget_rows)
    tq -= tq % 32
    tq = max(tq, 32)
    # Prefer a divisor of seq_len (no partial trailing block); else fall back.
    for cand in range(tq, 31, -32):
        if seq_len % cand == 0:
            return cand
    return tq


def padding_mask(x: jax.Array, pad_idx: int, offset: int = 0) -> jax.Array:
    """Pallas equivalent of PaddingMask.forward: (B, S) ids -> (B, S, offset+S) bool."""
    assert x.ndim == 2, "expected (batch, seq_len)"
    b, s = x.shape
    k = offset + s

    # Hoist compare + offset handling out of the kernel: (B, 1, K) bool row mask.
    row = (x == pad_idx)
    if offset:
        row = jnp.pad(row, ((0, 0), (offset, 0)), constant_values=False)
    row = row[:, None, :]  # (B, 1, K) bool

    block_budget, vmem_limit = _chip_budgets()
    tq = _choose_query_tile(s, k, block_budget)
    grid = (b, pl.cdiv(s, tq))

    out = pl.pallas_call(
        _padding_mask_kernel,
        out_shape=jax.ShapeDtypeStruct((b, s, k), jnp.bool_),
        grid=grid,
        in_specs=[pl.BlockSpec((1, 1, k), lambda bi, qi: (bi, 0, 0))],
        out_specs=pl.BlockSpec((1, tq, k), lambda bi, qi: (bi, qi, 0)),
        compiler_params=pltpu.CompilerParams(
            dimension_semantics=("parallel", "parallel"),
            vmem_limit_bytes=vmem_limit,
        ),
        cost_estimate=pl.CostEstimate(
            flops=0,
            transcendentals=0,
            bytes_accessed=b * s * k + b * k,
        ),
    )(row)
    return out


def _reference(x, pad_idx, offset):
    is_pad = (x == pad_idx)[:, None, :]                  # (B, 1, S)
    shifted = jnp.zeros(x.shape[:-1] + (1, offset), dtype=jnp.bool_)
    mask = jnp.concatenate([shifted, is_pad], axis=-1)   # (B, 1, offset+S)
    return jnp.broadcast_to(mask, x.shape + (mask.shape[-1],))


if __name__ == "__main__":
    key = jax.random.PRNGKey(0)
    pad_idx = 0

    # Case 1: original small shape (batch=2, seq_len=8, offset=3).
    batch, seq_len, offset = 2, 8, 3
    x1 = jax.random.randint(key, (batch, seq_len), 0, 5, dtype=jnp.int32)
    out1 = jax.block_until_ready(padding_mask(x1, pad_idx, offset=offset))
    ref1 = _reference(x1, pad_idx, offset)
    assert out1.shape == (batch, seq_len, offset + seq_len)
    assert out1.dtype == jnp.bool_
    assert bool(jnp.array_equal(out1, ref1))

    # Case 2: ragged shapes -- partial trailing query block (40 % 32 != 0) and
    # key width not a multiple of 128 (exercises the full-dim last block path).
    batch2, seq_len2, offset2 = 2, 40, 3
    x2 = jax.random.randint(jax.random.PRNGKey(1), (batch2, seq_len2), 0, 5,
                            dtype=jnp.int32)
    out2 = jax.block_until_ready(padding_mask(x2, pad_idx, offset=offset2))
    ref2 = _reference(x2, pad_idx, offset2)
    assert out2.shape == (batch2, seq_len2, offset2 + seq_len2)
    assert out2.dtype == jnp.bool_
    assert bool(jnp.array_equal(out2, ref2))

    print("KERNEL_OK")
</pallas_src>

<mosaic_0001>
module attributes {stable_mosaic.version = 11 : i64} {
  func.func @_padding_mask_kernel(%arg0: i32, %arg1: i32, %arg2: memref<1x1x11xi32, #tpu.memory_space<vmem>>, %arg3: memref<1x8x11xi32, #tpu.memory_space<vmem>>) attributes {dimension_semantics = [#tpu.dimension_semantics<parallel>, #tpu.dimension_semantics<parallel>], iteration_bounds = array<i64: 2, 1>, scalar_prefetch = 0 : i64, scratch_operands = 0 : i64, tpu.core_type = #tpu.core_type<tc>, window_params = [{transform_indices = @transform_0, window_bounds = array<i64: 1, 1, 11>}, {transform_indices = @transform_1, window_bounds = array<i64: 1, 8, 11>}]} {
    %c0 = arith.constant 0 : index
    %c0_0 = arith.constant 0 : index
    %c0_1 = arith.constant 0 : index
    %0 = vector.load %arg2[%c0, %c0_0, %c0_1] : memref<1x1x11xi32, #tpu.memory_space<vmem>>, vector<1x1x11xi32>
    %cst = arith.constant dense<0> : vector<1x1x11xi32>
    %1 = arith.cmpi ne, %0, %cst : vector<1x1x11xi32>
    %2 = vector.shape_cast %1 : vector<1x1x11xi1> to vector<1x1x11xi1>
    %3 = vector.broadcast %2 : vector<1x1x11xi1> to vector<1x8x11xi1>
    %c0_2 = arith.constant 0 : index
    %c0_3 = arith.constant 0 : index
    %c0_4 = arith.constant 0 : index
    %4 = vector.load %arg3[%c0_2, %c0_3, %c0_4] : memref<1x8x11xi32, #tpu.memory_space<vmem>>, vector<1x8x11xi32>
    %5 = arith.extui %3 : vector<1x8x11xi1> to vector<1x8x11xi32>
    %cst_5 = arith.constant dense<0> : vector<1x8x11xi32>
    %6 = arith.cmpi ne, %4, %cst_5 : vector<1x8x11xi32>
    tpu.vector_store %arg3[%c0_2, %c0_3, %c0_4], %5 {strides = array<i32>} : memref<1x8x11xi32, #tpu.memory_space<vmem>>, vector<1x8x11xi32>,
    return
  }
  func.func @transform_0(%arg0: i32, %arg1: i32) -> (i32, i32, i32) {
    %c0_i32 = arith.constant 0 : i32
    %c0_i32_0 = arith.constant 0 : i32
    %c0_i32_1 = arith.constant 0 : i32
    return %arg0, %c0_i32, %c0_i32_0 : i32, i32, i32
  }
  func.func @transform_1(%arg0: i32, %arg1: i32) -> (i32, i32, i32) {
    %c0_i32 = arith.constant 0 : i32
    %c0_i32_0 = arith.constant 0 : i32
    return %arg0, %arg1, %c0_i32 : i32, i32, i32
  }
}

</mosaic_0001>

<bundles_post_ra>
// kernel: tpu_custom_call.1
= control target key start
LH: loop header
LB: loop body
LE: loop exit
PB: predicated region body
PF: predicated region fallthrough
CT: control target
= control target key end

     0   :  { %s273_s6 = smov 0   ;;  %s275_s7 = smov 0   ;;  %s294_s0 = inlined_call_operand.vmem [shape: s32[2,1,11], index: 0, kind: input, shape index: {}]   ;;  %s295_s1 = inlined_call_operand.vmem [shape: s32[2,8,11], index: 1, kind: output, shape index: {}]  }
   0x1   :  { %s277_s8 = smov 0  }
   0x2 LB: > { %s23_s9 = sadd.s32 1, %s256_s7  ;;  %p209_p0 = scmp.ge.s32.totalorder %s260_s8, 1  ;;  %s260_s8 = sphi %s277_s8, %s11_s8   ;;  %s256_s7 = sphi %s275_s7, %s297_s7   ;;  %s252_s6 = sphi %s273_s6, %s296_s6  }
   0x3   : > { %p25_p1 = scmp.ge.s32.totalorder %s23_s9, 2  ;;  %p99_p2 = scmp.lt.s32.totalorder %s260_s8, 3 }
   0x5   : > { %s299_s9 = smov (%p25_p1, %s23_s9), 0  ;;  %p100_p3 = pnand %p209_p0, %p99_p2 }
   0x6   : > { %p119_p4 = scmp.lt.s32.totalorder (!%p100_p3), %s252_s6, 1 }
   0x7   : > { %103 = sbr.rel (%p100_p3) target bundleno = 22 (0x16), region = 24 }
   0xc   : > { %s301_s6 = smov (!%p119_p4, %s252_s6), 1  ;;  %v262_v1 = vmov 0   ;;  %vm135_vm1 = vcmask 89088  }
   0xd   : > { %s121_s12 = scalar_lea.vmem %s294_s0, %s301_s6  ;;  %s210_s13 = sshll.u32 %s301_s6, 3 }
   0xe   : > { %v129_v0 = vld [vmem:[%s121_s12] sm:$0x1]  ;;  %s128_s16 = scalar_lea.vmem %s295_s1, %s210_s13 }
   0xf   : > { %vm130_vm0 = vcmp.ne.s32.totalorder %v129_v0, 0 }
  0x10   : > { %v131_v2 = vsel %vm130_vm0, 1, %v262_v1 }
  0x11   : > { %v132_v3 = vperm.slane %v131_v2, 0 }
  0x13   : > { %vm133_vm2 = vcmp.eq.s32.totalorder %v132_v3, 1 }
  0x14   : > { %v134_v4 = vsel %vm133_vm2, 1, %v262_v1 }
  0x15   : > { %136 = vst.msk [vmem:[%s128_s16] sm:$0xff] %vm135_vm1, %v134_v4 }
  0x16 PF: > { %s11_s8 = sadd.s32 1, %s260_s8   ;;  %s296_s6 = smov %s256_s7 }
  0x17   : > { %p8_p5 = scmp.ge.s32.totalorder %s11_s8, 4   ;;  %s297_s7 = smov %s299_s9 }
  0x19   :  { %10 = sbr.rel (!%p8_p5) target bundleno = 2 (0x2), region = 54 }

</bundles_post_ra>
